<compile_context>
chip_gen: v5e
topology: v5e:2x2
jax: 0.10.0
libtpu: 0.0.40
codegen_flags: <defaults>
</compile_context>

<pallas_src>
import functools
import math

import jax
import jax.numpy as jnp
from jax.experimental import pallas as pl
from jax.experimental.pallas import tpu as pltpu


def _rmsnorm_kernel(x_ref, scale_ref, o_ref, *, d_x, full_sum, eps):
    # x_ref:     (tile_rows, d_pad)  VMEM
    # scale_ref: (1, d_pad)          VMEM (broadcast over rows)
    # o_ref:     (tile_rows, d_pad)  VMEM
    x = x_ref[...].astype(jnp.float32)

    if full_sum:
        # p < 0 path (d_x == d): lane-padded feature columns are zero, so the
        # sum over the padded width equals the sum over the original d.
        sumsq = jnp.sum(x * x, axis=-1, keepdims=True)          # (tile_rows, 1)
    else:
        # Partial RMSNorm: mask columns >= d_x instead of slicing (in-kernel
        # slices are not views; a non-128-aligned column slice costs a VMEM
        # copy plus masked vregs before the reduction).
        col = jax.lax.broadcasted_iota(jnp.int32, x.shape, dimension=1)
        xm = jnp.where(col < d_x, x, 0.0)
        sumsq = jnp.sum(xm * xm, axis=-1, keepdims=True)

    rms = jnp.sqrt(sumsq) * (float(d_x) ** -0.5)
    # One reciprocal per row (EUP slot) + broadcast multiply instead of a
    # per-element divide.  approx=False keeps numerics tight vs the reference.
    inv = pl.reciprocal(rms + eps, approx=False)                # (tile_rows, 1)
    out = x * inv * scale_ref[...].astype(jnp.float32)
    o_ref[...] = out.astype(o_ref.dtype)


def rmsnorm(x, scale, *, p=-1.0, eps=1e-8, target_block_bytes=2 * 1024 * 1024):
    """RMSNorm over the last axis of `x` using a Pallas TPU kernel.

    x:     (..., d)
    scale: (d,)
    """
    d = x.shape[-1]
    if p < 0.0 or p > 1.0:
        d_x = d
    else:
        d_x = int(d * p)

    lead_shape = x.shape[:-1]
    rows = math.prod(lead_shape) if lead_shape else 1
    x2d = x.reshape(rows, d)

    # --- Lane padding: feature dim to a multiple of 128 (lane-dense vst) ----
    d_pad = ((d + 127) // 128) * 128
    if d_pad != d:
        x2d = jnp.pad(x2d, ((0, 0), (0, d_pad - d)))
        scale_p = jnp.pad(scale, (0, d_pad - d))
    else:
        scale_p = scale
    scale2d = scale_p.reshape(1, d_pad)

    # --- Row-tile selection: ~target_block_bytes per block, whole vregs ------
    itemsize = jnp.dtype(x.dtype).itemsize
    sublane = {4: 8, 2: 16, 1: 32}.get(itemsize, 8)      # sublane packing
    tile = (target_block_bytes // (d_pad * itemsize)) // sublane * sublane
    tile = max(sublane, tile)
    rows_ceil = ((rows + sublane - 1) // sublane) * sublane
    tile = min(tile, rows_ceil)
    # Prefer >= 2 grid steps so both TensorCores get work on v7x megacore.
    while tile > sublane and pl.cdiv(rows, tile) < 2:
        tile = max(sublane, (tile // 2) // sublane * sublane)

    # --- Row padding: whole number of tiles (no whole-array fallback) --------
    rows_pad = pl.cdiv(rows, tile) * tile
    if rows_pad != rows:
        x2d = jnp.pad(x2d, ((0, rows_pad - rows), (0, 0)))
    grid = (rows_pad // tile,)

    kernel = functools.partial(
        _rmsnorm_kernel, d_x=d_x, full_sum=(d_x == d), eps=float(eps)
    )

    out2d = pl.pallas_call(
        kernel,
        out_shape=jax.ShapeDtypeStruct((rows_pad, d_pad), x.dtype),
        grid_spec=pltpu.PrefetchScalarGridSpec(
            num_scalar_prefetch=0,
            grid=grid,
            in_specs=[
                pl.BlockSpec((tile, d_pad), lambda i: (i, 0)),   # x row-tile
                pl.BlockSpec((1, d_pad), lambda i: (0, 0)),      # scale (shared)
            ],
            out_specs=pl.BlockSpec((tile, d_pad), lambda i: (i, 0)),
        ),
        compiler_params=pltpu.CompilerParams(
            dimension_semantics=("parallel",),
            # ~2 MiB blocks x (2 in-bufs + 2 out-bufs) + scale << 32 MiB:
            # fits v5e/v6e/v7x scoped VMEM with double-buffering headroom.
            vmem_limit_bytes=32 * 1024 * 1024,
        ),
    )(x2d, scale2d)

    out2d = out2d[:rows, :d]
    return out2d.reshape(*lead_shape, d)


def rmsnorm_ref(x, scale, *, p=-1.0, eps=1e-8):
    """Pure-JAX reference mirroring the PyTorch forward."""
    d = x.shape[-1]
    if p < 0.0 or p > 1.0:
        d_x = d
        part = x
    else:
        d_x = int(d * p)
        part = x[..., :d_x]
    norm_x = jnp.linalg.norm(part.astype(jnp.float32), ord=2, axis=-1, keepdims=True)
    rms_x = norm_x * (float(d_x) ** -0.5)
    x_normed = x.astype(jnp.float32) / (rms_x + eps)
    return (scale.astype(jnp.float32) * x_normed).astype(x.dtype)


if __name__ == "__main__":
    # Shapes implied by the module: x is (..., d); use batch=2, seq=8, hidden=32.
    key = jax.random.PRNGKey(0)
    batch, seq, d = 2, 8, 32
    x = jax.random.normal(key, (batch, seq, d), dtype=jnp.float32)

    # Deterministic parameter init, matching nn.Parameter(torch.ones(d)).
    scale = jnp.ones((d,), dtype=jnp.float32)
    # TODO(synk): bias=True path (offset parameter) not exercised; default module has bias=False.

    # Default path: p < 0 (full RMSNorm).
    out = rmsnorm(x, scale, p=-1.0, eps=1e-8)
    out = jax.block_until_ready(out)
    ref = rmsnorm_ref(x, scale, p=-1.0, eps=1e-8)
    assert out.shape == x.shape and out.dtype == x.dtype
    assert jnp.allclose(out, ref, atol=1e-5, rtol=1e-5), "mismatch vs reference (p<0)"

    # Partial RMSNorm path: p = 0.5 (masked reduction over first d/2 features).
    out_p = jax.block_until_ready(rmsnorm(x, scale, p=0.5, eps=1e-8))
    ref_p = rmsnorm_ref(x, scale, p=0.5, eps=1e-8)
    assert jnp.allclose(out_p, ref_p, atol=1e-5, rtol=1e-5), "mismatch vs reference (p=0.5)"

    print("KERNEL_OK")
</pallas_src>

<mosaic_0001>
module attributes {stable_mosaic.version = 11 : i64} {
  func.func @_rmsnorm_kernel(%arg0: i32, %arg1: memref<8x128xf32, #tpu.memory_space<vmem>>, %arg2: memref<1x128xf32, #tpu.memory_space<vmem>>, %arg3: memref<8x128xf32, #tpu.memory_space<vmem>>) attributes {dimension_semantics = [#tpu.dimension_semantics<parallel>], iteration_bounds = array<i64: 2>, scalar_prefetch = 0 : i64, scratch_operands = 0 : i64, tpu.core_type = #tpu.core_type<tc>, window_params = [{transform_indices = @transform_0, window_bounds = array<i64: 8, 128>}, {pipeline_mode = #tpu.pipeline_mode<synchronous>, transform_indices = @transform_1, window_bounds = array<i64: 1, 128>}, {transform_indices = @transform_2, window_bounds = array<i64: 8, 128>}]} {
    %c0 = arith.constant 0 : index
    %c0_0 = arith.constant 0 : index
    %0 = vector.load %arg1[%c0, %c0_0] : memref<8x128xf32, #tpu.memory_space<vmem>>, vector<8x128xf32>
    %1 = arith.mulf %0, %0 : vector<8x128xf32>
    %cst = arith.constant dense<0.000000e+00> : vector<8xf32>
    %2 = vector.multi_reduction <add>, %1, %cst [1] : vector<8x128xf32> to vector<8xf32>
    %3 = vector.shape_cast %2 : vector<8xf32> to vector<8x1xf32>
    %4 = math.sqrt %3 : vector<8x1xf32>
    %cst_1 = arith.constant 0.176776692 : f32
    %5 = vector.broadcast %cst_1 : f32 to vector<8x1xf32>
    %6 = arith.mulf %4, %5 : vector<8x1xf32>
    %cst_2 = arith.constant 9.99999993E-9 : f32
    %7 = vector.broadcast %cst_2 : f32 to vector<8x1xf32>
    %8 = arith.addf %6, %7 : vector<8x1xf32>
    %9 = tpu.reciprocal %8 : vector<8x1xf32> -> vector<8x1xf32>
    %10 = vector.broadcast %9 : vector<8x1xf32> to vector<8x128xf32>
    %11 = arith.mulf %0, %10 : vector<8x128xf32>
    %c0_3 = arith.constant 0 : index
    %c0_4 = arith.constant 0 : index
    %12 = vector.load %arg2[%c0_3, %c0_4] : memref<1x128xf32, #tpu.memory_space<vmem>>, vector<1x128xf32>
    %13 = vector.broadcast %12 : vector<1x128xf32> to vector<8x128xf32>
    %14 = arith.mulf %11, %13 : vector<8x128xf32>
    %c0_5 = arith.constant 0 : index
    %c0_6 = arith.constant 0 : index
    %15 = vector.load %arg3[%c0_5, %c0_6] : memref<8x128xf32, #tpu.memory_space<vmem>>, vector<8x128xf32>
    tpu.vector_store %arg3[%c0_5, %c0_6], %14 {strides = array<i32>} : memref<8x128xf32, #tpu.memory_space<vmem>>, vector<8x128xf32>,
    return
  }
  func.func @transform_0(%arg0: i32) -> (i32, i32) {
    %c0_i32 = arith.constant 0 : i32
    %c0_i32_0 = arith.constant 0 : i32
    return %arg0, %c0_i32 : i32, i32
  }
  func.func @transform_1(%arg0: i32) -> (i32, i32) {
    %c0_i32 = arith.constant 0 : i32
    %c0_i32_0 = arith.constant 0 : i32
    %c0_i32_1 = arith.constant 0 : i32
    return %c0_i32, %c0_i32_0 : i32, i32
  }
  func.func @transform_2(%arg0: i32) -> (i32, i32) {
    %c0_i32 = arith.constant 0 : i32
    %c0_i32_0 = arith.constant 0 : i32
    return %arg0, %c0_i32 : i32, i32
  }
}

</mosaic_0001>

<bundles_post_ra>
// kernel: tpu_custom_call.1
= control target key start
LH: loop header
LB: loop body
LE: loop exit
PB: predicated region body
PF: predicated region fallthrough
CT: control target
= control target key end

     0   :  { %7 = vsyncpa [#allocation3], 0  ;;  %s677_s0 = inlined_call_operand.hbm [shape: f32[16,128], index: 0, kind: input, shape index: {}]   ;;  %s678_s1 = inlined_call_operand.hbm [shape: f32[1,128], index: 1, kind: input, shape index: {}]   ;;  %s679_s2 = inlined_call_operand.hbm [shape: f32[16,128], index: 2, kind: output, shape index: {}]  }
   0x1   :  { %9 = vsyncpa [#allocation3 + $0x1], 0 }
   0x2   :  { %10 = vsyncpa [#allocation6], 0 }
   0x3   :  { %11 = vsyncpa [#allocation4], 0 }
   0x4   :  { %13 = vsyncpa [#allocation4 + $0x1], 0  ;;  %s535_s9 = smov 0   ;;  %s537_s10 = smov 0  }
   0x5   :  { %s539_s11 = smov 0   ;;  %s541_s12 = smov 0  }
   0x6 LB: > { %s556_s13 = sadd.s32 4294967295, %s517_s12   ;;  %s311_s14 = sadd.s32 4294967294, %s517_s12   ;;  %s517_s12 = sphi %s541_s12, %s689_s12   ;;  %s513_s11 = sphi %s539_s11, %s688_s11   ;;  %s509_s10 = sphi %s537_s10, %s687_s10   ;;  %s505_s9 = sphi %s535_s9, %s686_s9  }
   0x7   : > { %p39_p0 = scmp.ne.s32.totalorder %s509_s10, %s505_s9  ;;  %p40_p1 = scmp.eq.s32.totalorder %s556_s13, 0 }
   0x8   : > { %p84_p2 = scmp.eq.s32.totalorder %s556_s13, 1  ;;  %p90_p3 = scmp.eq.s32.totalorder %s311_s14, 1 }
   0x9   : > { %p565_p4 = por %p40_p1, %p39_p0  ;;  %p312_p5 = scmp.ge.s32.totalorder %s517_s12, 1 }
   0xa   : > { %p570_p6 = por %p90_p3, %p39_p0  ;;  %p97_p7 = scmp.lt.s32.totalorder %s517_s12, 3 }
   0xb   : > { %s109_s19 = sshll.u32 %s678_s1, 4  ;;  %s519_s21 = smov [#allocation5]   ;;  %s110_s19 = int_to_ptr.hbm [resolvable:$true] %s109_s19 }
   0xc   : > { %p578_p8 = pnand %p312_p5, %p97_p7  ;;  %s111_s22 = sshll.u32 %s519_s21, 4  ;;  %s112_s22 = int_to_ptr.vmem [resolvable:$true] %s111_s22 }
   0xd   : > { %s588_s23 = sadd.s32 1, %s517_s12   ;;  %s26_s24 = sadd.s32 1, %s513_s11 }
   0xe   : > { %p333_p10 = pneg %p578_p8  ;;  %s23_s25 = ssub.s32 %s517_s12, %s588_s23 }
   0xf   : > { %p24_p12 = scmp.eq.s32.totalorder %s23_s25, 0  ;;  %p33_p13 = scmp.ne.s32.totalorder %s513_s11, %s509_s10 }
  0x10   : > { %p334_p11 = pnand %p333_p10, %p40_p1  ;;  %p34_p0 = scmp.eq.s32.totalorder %s517_s12, 0 }
  0x11   : > { %s597_s26 = scalar_select %p24_p12, %s513_s11, %s26_s24  }
  0x12   : > { %336 = dma.hbm_to_vmem [thread:$0]  (!%p334_p11), %s110_s19, 16, %s112_s22, [#allocation6]  }
  0x13   : > { %p601_p3 = por %p84_p2, %p33_p13  ;;  %p346_p5 = scmp.lt.s32.totalorder %s517_s12, 2 }
  0x14   : > { %s122_s28 = sand.u32 1, %s513_s11   ;;  %s316_s29 = sshll.u32 %s517_s12, 3 }
  0x15   : > { %p35_p7 = por %p34_p0, %p33_p13  ;;  %s315_s30 = sshll.u32 %s122_s28, 3 }
  0x16   : > { %s130_s5 = scalar_lea.hbm %s677_s0, %s316_s29  ;;  %s126_s7 = scalar_lea.vmem [#allocation2], %s315_s30 }
  0x17   : > { %s132_s6 = sshll.u32 %s130_s5, 4  ;;  %s134_s8 = sshll.u32 %s126_s7, 4  ;;  %s133_s6 = int_to_ptr.hbm [resolvable:$true] %s132_s6  ;;  %s135_s8 = int_to_ptr.vmem [resolvable:$true] %s134_s8 }
  0x18   : > { %p611_p10 = pnand %p346_p5, %p35_p7  ;;  %s123_s17 = scalar_lea.sflag [#allocation3], %s122_s28 }
  0x19   : > { %s417_s18 = sshra.s32 %s133_s6, 4  ;;  %s424_s24 = scalar_lea.hbm %s677_s0, 16  ;;  %s418_s18 = int_to_ptr.hbm [resolvable:$true] %s417_s18 }
  0x1a   : > { %s419_s19 = scalar_lea.hbm %s418_s18, 8  ;;  %p421_p11 = pneg %p611_p10 }
  0x1b   : > { %p420_p2 = scmp.ne.s32.totalorder %s418_s18, %s419_s19  ;;  %p425_p0 = scmp.lt.s32.totalorder %s418_s18, %s677_s0 }
  0x1c   : > { %p426_p5 = scmp.lt.s32.totalorder %s424_s24, %s419_s19 }
  0x1d   : > { %p422_p12 = pnand %p421_p11, %p420_p2 }
  0x1e   : > { %p427_p7 = por %p426_p5, %p425_p0 }
  0x1f   : > { %p423_p13 = pneg %p422_p12 }
  0x21   : > { %p428_p9 = pnand %p427_p7, %p423_p13 }
  0x23   : > { %431 = shalt.err (!%p428_p9)
}
  0x24   : > { %340 = dma.hbm_to_vmem [thread:$0]  (!%p611_p10), %s133_s6, 128, %s135_s8, %s123_s17  }
  0x25   : > { %143 = sbr.rel (%p578_p8) target bundleno = 213 (0xd5), region = 28  ;;  %s628_s28 = sand.u32 (!%p578_p8), 1, %s509_s10  }
  0x26   : > { %s318_s30 = sshll.u32 (!%p578_p8), %s628_s28, 3  ;;  %s146_s3 = scalar_lea.sflag (!%p578_p8), [#allocation3], %s628_s28 }
  0x27   : > { %s149_s4 = scalar_lea.vmem (!%p578_p8), [#allocation2], %s318_s30 }
  0x2a   : > { %492 = dma.done.wait (%p565_p4), %s146_s3, 128  }
  0x2b   : > { %494 = vsyncadd (%p565_p4), %s146_s3, 4294967168 }
  0x2c   : > { %496 = dma.done.wait (%p40_p1), [#allocation6], 16  }
  0x2d   : > { %498 = vsyncadd (%p40_p1), [#allocation6], 4294967280  ;;  %v176_v0 = vld [vmem:[%s149_s4] sm:$0xff]  ;;  %s322_s15 = sshll.u32 %s556_s13, 3  ;;  %v382_v24 = vld [vmem:[#allocation5] ss:$0 sm:$0xff] }
  0x2e   : > { %v177_v1 = vmul.f32 %v176_v0, %v176_v0  ;;  %s226_s6 = scalar_lea.hbm %s679_s2, %s322_s15  ;;  %s175_s7 = scalar_lea.vmem [#allocation7], %s318_s30 }
  0x2f   : > { %s228_s13 = sshll.u32 %s175_s7, 4  ;;  %s230_s8 = sshll.u32 %s226_s6, 4  ;;  %s229_s13 = int_to_ptr.vmem [resolvable:$true] %s228_s13  ;;  %s231_s8 = int_to_ptr.hbm [resolvable:$true] %s230_s8 }
  0x30   : > { %178 = vadd.xlane.f32.xlu0 %v177_v1  ;;  %s216_s14 = scalar_lea.sflag [#allocation4], %s628_s28  ;;  %s461_s17 = sshra.s32 %s231_s8, 4  ;;  %s462_s17 = int_to_ptr.hbm [resolvable:$true] %s461_s17 }
  0x31   : > { %s463_s18 = scalar_lea.hbm %s462_s17, 8  ;;  %s467_s22 = scalar_lea.hbm %s679_s2, 16 }
  0x32   : > { %p464_p1 = scmp.ne.s32.totalorder %s462_s17, %s463_s18  ;;  %p468_p9 = scmp.lt.s32.totalorder %s462_s17, %s679_s2 }
  0x33   : > { %p469_p10 = scmp.lt.s32.totalorder %s467_s22, %s463_s18 }
  0x34   : > { %p465_p4 = pnand %p464_p1, %p601_p3 }
  0x35   : > { %p470_p2 = por %p469_p10, %p468_p9 }
  0x36   : > { %p466_p8 = pneg %p465_p4 }
  0x38   : > { %p471_p11 = pnand %p470_p2, %p466_p8 }
  0xa3   : > { %v179_v2 = vpop.xlane.xlu0 %178 }
  0xa4   : > { %383 = vrsqrt.f32 %v179_v2  ;;  %vm187_vm0 = vcmp.eq.f32.partialorder %v179_v2, inf  ;;  %v190_v10 = vand.u32 2147483648, %v179_v2  ;;  %vm189_vm1 = vcmp.eq.f32.partialorder %v179_v2, 0.0 }
  0xaa   : > { %v384_v3 = vpop.eup %383 }
  0xab   : > { %v181_v4 = vmul.f32 %v384_v3, %v179_v2 }
  0xad   : > { %v182_v5 = vmul.f32 %v384_v3, %v181_v4 }
  0xaf   : > { %v183_v6 = vmul.f32 0.5, %v182_v5 }
  0xb1   : > { %v184_v7 = vsub.f32 1.5, %v183_v6 }
  0xb3   : > { %v185_v8 = vmul.f32 %v384_v3, %v184_v7 }
  0xb5   : > { %v186_v9 = vmul.f32 %v185_v8, %v179_v2 }
  0xb7   : > { %v188_v11 = vsel %vm187_vm0, %v179_v2, %v186_v9 }
  0xb8   : > { %v191_v12 = vsel %vm189_vm1, %v190_v10, %v188_v11 }
  0xb9   : > { %v192_v13 = vmul.f32 0.17677669, %v191_v12 }
  0xbb   : > { %v193_v14 = vadd.f32 1e-08, %v192_v13 }
  0xbd   : > { %385 = vrcp.f32 %v193_v14  ;;  %v205_v18 = vand.u32 2147483648, %v193_v14  ;;  %v203_v20 = vand.u32 2147483647, %v193_v14  ;;  %vm199_vm3 = vweird.f32 %v193_v14 }
  0xbf   : > { %v206_v22 = vor.u32 1.1754944e-38, %v205_v18  ;;  %vm204_vm5 = vcmp.eq.f32.partialorder %v203_v20, 8.507059e+37 }
  0xc3   : > { %v386_v15 = vpop.eup %385 }
  0xc4   : > { %v195_v16 = vmul.f32 %v386_v15, %v193_v14  ;;  %vm200_vm2 = vweird.f32 %v386_v15 }
  0xc5   : > { %vm201_vm4 = vmor %vm199_vm3, %vm200_vm2 }
  0xc6   : > { %v196_v17 = vsub.f32 1.0, %v195_v16 }
  0xc8   : > { %v197_v19 = vmul.f32 %v386_v15, %v196_v17 }
  0xca   : > { %v198_v21 = vadd.f32 %v386_v15, %v197_v19 }
  0xcc   : > { %v202_v23 = vsel %vm201_vm4, %v386_v15, %v198_v21 }
  0xcd   : > { %v207_v25 = vsel %vm204_vm5, %v206_v22, %v202_v23 }
  0xce   : > { %v208_v26 = vmul.f32 %v207_v25, %v176_v0 }
  0xd0   : > { %v213_v27 = vmul.f32 %v382_v24, %v208_v26 }
  0xd2   : > { %214 = vst [vmem:[%s175_s7] sm:$0xff] %v213_v27 }
  0xd3   : > { %474 = shalt.err (!%p471_p11)
}
  0xd4   : > { %331 = dma.vmem_to_hbm [thread:$0]  (%p601_p3), %s229_s13, 128, %s231_s8, %s216_s14  }
  0xd5 PF: > { %s242_s29 = sand.u32 1, %s505_s9   ;;  %p685_p12 = scmp.ge.s32.totalorder %s517_s12, 2 }
  0xd6   : > { %s243_s28 = scalar_lea.sflag [#allocation4], %s242_s29 }
  0xd7   : > { %p342_p13 = pnand %p685_p12, %p570_p6 }
  0xd9   : > { %p343_p0 = pneg %p342_p13 }
  0xdb   : > { %500 = dma.done.wait (%p343_p0), %s243_s28, 128  }
  0xdc   : > { %502 = vsyncadd (%p343_p0), %s243_s28, 4294967168  ;;  %p16_p5 = scmp.ge.s32.totalorder %s588_s23, 4   ;;  %s686_s9 = smov %s509_s10 }
  0xdd   : > { %s687_s10 = smov %s513_s11  ;;  %s688_s11 = smov %s597_s26 }
  0xde   : > { %s689_s12 = smov %s588_s23  ;;  %18 = sbr.rel (!%p16_p5) target bundleno = 6 (0x6), region = 77 }
  0xe3   :  { %249 = vsyncpa [#allocation3], 1 }
  0xe4   :  { %251 = vsyncpa [#allocation3 + $0x1], 1 }
  0xe5   :  { %252 = vsyncpa [#allocation6], 1 }
  0xe6   :  { %253 = vsyncpa [#allocation4], 1 }
  0xe7   :  { %255 = vsyncpa [#allocation4 + $0x1], 1 }

</bundles_post_ra>
